<compile_context>
chip_gen: v6e
topology: v6e:2x2x1
jax: 0.10.0
libtpu: 0.0.40
codegen_flags: <defaults>
</compile_context>

<pallas_src>
import jax
import jax.numpy as jnp
from jax.experimental import pallas as pl
from jax.experimental.pallas import tpu as pltpu


_RESIDENT_W1_BYTES = 20 * 1024 * 1024  # keep w1 fully VMEM-resident below this


def _round_up(x, m):
    return ((x + m - 1) // m) * m


def _choose_tm(B, n_h, x_itemsize, tm=None, *, target_bytes=2 << 20, max_tm=2048):
    """Batch tile: multiple of 128, ~2 MiB of x per block, >=2 grid steps."""
    b128 = _round_up(max(B, 1), 128)
    if tm is not None:
        return min(max(128, (tm // 128) * 128), b128)
    tm = target_bytes // max(1, n_h * x_itemsize)
    tm = max(128, min(max_tm, (tm // 128) * 128))
    tm = min(tm, b128)
    if b128 >= 256:  # keep at least 2 batch steps (v7x megacore + pipelining)
        tm = min(tm, max(128, ((b128 // 2) // 128) * 128))
    return tm


def _choose_tn(n_h, w_itemsize, tn=None):
    """Feature tile for fc1 output columns (w1 / b1 / w2 blocks)."""
    if tn is not None:
        assert n_h % tn == 0, "tn must divide n_h"
        return tn
    if n_h * n_h * w_itemsize <= _RESIDENT_W1_BYTES or n_h % 128 != 0:
        return n_h  # w1 fully resident in VMEM
    for cand in (1024, 896, 768, 640, 512, 384, 256, 128):
        if n_h % cand == 0:
            return cand
    return n_h


def _vmem_limit_bytes(tm, tn, n_h, x_isz, w_isz, out_isz, w_bufs):
    """Explicit scoped-VMEM budget (default 16/32 MiB limits bite early)."""
    mib = 1024 * 1024
    lanes = lambda n: _round_up(n, 128)
    subl = lambda n: _round_up(n, 8)
    need = (
        w_bufs * subl(n_h) * lanes(tn) * w_isz        # w1 block(s)
        + 2 * subl(tm) * lanes(n_h) * x_isz           # x double-buffer
        + 2 * w_bufs * 8 * lanes(tn) * 4              # b1 + w2 rows (f32)
        + 2 * 8 * lanes(tm) * out_isz                 # lane-dense output blocks
        + subl(tm) * 128 * 4                          # f32 fc2 accumulator
        + 2 * subl(tm) * lanes(tn) * 4                # f32 h temporaries
    )
    try:
        phys = pltpu.get_tpu_info().vmem_capacity_bytes
    except Exception:
        phys = 64 * mib  # conservative (v7x per-TC)
    ceiling = int(phys * 0.85)
    return int(min(ceiling, max(need + 4 * mib, 32 * mib)))


def _detector_mlp_kernel(x_ref, w1_ref, b1_ref, w2_ref, b2_ref, o_ref, acc_ref):
    j = pl.program_id(1)

    @pl.when(j == 0)
    def _():
        acc_ref[...] = jnp.zeros_like(acc_ref)

    x = x_ref[...]
    if x.dtype != w1_ref.dtype:
        # In-VMEM cast (VPU) so bf16 operands reach the MXU; no extra HBM pass.
        x = x.astype(w1_ref.dtype)

    # fc1 column block on the MXU, f32 accumulation.
    h = jnp.dot(x, w1_ref[...], preferred_element_type=jnp.float32)
    h = jnp.maximum(h + b1_ref[...], 0.0)                       # (tm, tn) f32

    # fc2 partial sum over this feature block: VPU multiply + XLU lane reduce.
    acc_ref[...] += jnp.sum(h * w2_ref[...], axis=-1, keepdims=True)  # (tm, 1)

    @pl.when(j == pl.num_programs(1) - 1)
    def _():
        # Lane-dense store: transpose (tm,1) -> (1,tm) once per batch tile.
        o_ref[...] = (acc_ref[...] + b2_ref[0, 0]).T.astype(o_ref.dtype)


def detector_mlp(x, w1, b1, w2, b2, *, tm=None, tn=None,
                 matmul_dtype=jnp.bfloat16):
    """Forward pass of Detector_mlp.

    x : (B, n_h)    activations (f32 or bf16)
    w1: (n_h, n_h)  fc1 weight, stored (in, out) so the kernel computes x @ W1
    b1: (n_h,)      fc1 bias
    w2: (n_h, 1)    fc2 weight, stored (in, out)
    b2: (1,)        fc2 bias
    matmul_dtype    dtype of the MXU operands (bf16 default; f32 for exactness)
    returns (B, 1) in x.dtype
    """
    B, n_h = x.shape
    assert w1.shape == (n_h, n_h) and b1.shape == (n_h,)
    assert w2.shape == (n_h, 1) and b2.shape == (1,)

    w1 = w1.astype(matmul_dtype)                       # one-time cast, resident
    b1_row = b1.astype(jnp.float32).reshape(1, n_h)
    w2_row = w2.astype(jnp.float32).reshape(1, n_h)
    b2_sc = b2.astype(jnp.float32).reshape(1, 1)

    x_isz = jnp.dtype(x.dtype).itemsize
    w_isz = jnp.dtype(w1.dtype).itemsize

    tm = _choose_tm(B, n_h, x_isz, tm)
    tn = _choose_tn(n_h, w_isz, tn)

    b_pad = _round_up(B, tm)
    if b_pad != B:
        x = jnp.pad(x, ((0, b_pad - B), (0, 0)))

    n_i, n_j = b_pad // tm, n_h // tn
    resident = (n_j == 1)
    w_bufs = 1 if resident else 2
    vmem_limit = _vmem_limit_bytes(tm, tn, n_h, x_isz, w_isz, x_isz, w_bufs)

    def build(single_buffer_resident):
        # Grid-invariant operands only need one VMEM buffer (frees a full w1).
        kw = ({"pipeline_mode": pl.Buffered(1)}
              if (resident and single_buffer_resident) else {})
        return pl.pallas_call(
            _detector_mlp_kernel,
            out_shape=jax.ShapeDtypeStruct((1, b_pad), x.dtype),
            grid=(n_i, n_j),
            in_specs=[
                pl.BlockSpec((tm, n_h), lambda i, j: (i, 0)),        # x: streamed
                pl.BlockSpec((n_h, tn), lambda i, j: (0, j), **kw),  # w1
                pl.BlockSpec((1, tn), lambda i, j: (0, j), **kw),    # b1 row
                pl.BlockSpec((1, tn), lambda i, j: (0, j), **kw),    # w2 row
                pl.BlockSpec(memory_space=pltpu.MemorySpace.SMEM),   # b2 scalar
            ],
            out_specs=pl.BlockSpec((1, tm), lambda i, j: (0, i)),    # lane-dense
            scratch_shapes=[pltpu.VMEM((tm, 1), jnp.float32)],       # fc2 acc
            compiler_params=pltpu.CompilerParams(
                dimension_semantics=("parallel", "arbitrary"),
                vmem_limit_bytes=vmem_limit),
        )

    args = (x, w1, b1_row, w2_row, b2_sc)
    try:
        out_row = build(True)(*args)
    except Exception:
        # TODO(synk): remove this fallback once pl.Buffered(1) single-buffering
        # of grid-invariant operands is confirmed on all deployed JAX versions.
        out_row = build(False)(*args)

    return out_row[0, :B].reshape(B, 1)


def init_params(key, n_h, dtype=jnp.float32):
    """Deterministic init matching PyTorch Linear shapes.

    PyTorch nn.Linear(n_h, n_h).weight has shape (out, in); we store the
    transposed (in, out) layout so the kernel computes x @ W."""
    k1, k2, k3, k4 = jax.random.split(key, 4)
    bound = 1.0 / jnp.sqrt(n_h)
    w1 = jax.random.uniform(k1, (n_h, n_h), dtype, -bound, bound)  # (in, out)
    b1 = jax.random.uniform(k2, (n_h,), dtype, -bound, bound)
    w2 = jax.random.uniform(k3, (n_h, 1), dtype, -bound, bound)    # (in, out)
    b2 = jax.random.uniform(k4, (1,), dtype, -bound, bound)
    return w1, b1, w2, b2


def detector_mlp_ref(x, w1, b1, w2, b2):
    h = jnp.maximum(x @ w1 + b1, 0.0)
    return h @ w2 + b2


if __name__ == "__main__":
    key = jax.random.PRNGKey(0)
    kx, kp = jax.random.split(key)

    # Small shapes consistent with the module.
    batch, n_h = 300, 32
    x = jax.random.normal(kx, (batch, n_h), jnp.float32)
    w1, b1, w2, b2 = init_params(kp, n_h)
    ref = detector_mlp_ref(x, w1, b1, w2, b2)

    # Exact path: f32 operands on the MXU.
    out_f32 = jax.block_until_ready(
        detector_mlp(x, w1, b1, w2, b2, matmul_dtype=jnp.float32))
    assert out_f32.shape == (batch, 1), out_f32.shape
    assert jnp.allclose(out_f32, ref, atol=1e-4, rtol=1e-4), (
        float(jnp.max(jnp.abs(out_f32 - ref))))

    # Default perf path: bf16 operands on the MXU, f32 accumulation.
    out_bf16 = jax.block_until_ready(detector_mlp(x, w1, b1, w2, b2))
    assert out_bf16.shape == (batch, 1), out_bf16.shape
    assert jnp.allclose(out_bf16, ref, atol=1e-1, rtol=1e-1), (
        float(jnp.max(jnp.abs(out_bf16 - ref))))

    # Feature-axis split path (w1 streamed in column blocks, fc2 accumulated).
    batch2, n_h2 = 256, 256
    x2 = jax.random.normal(kx, (batch2, n_h2), jnp.float32)
    w1b, b1b, w2b, b2b = init_params(kp, n_h2)
    ref2 = detector_mlp_ref(x2, w1b, b1b, w2b, b2b)
    out2 = jax.block_until_ready(
        detector_mlp(x2, w1b, b1b, w2b, b2b, tn=128, matmul_dtype=jnp.float32))
    assert out2.shape == (batch2, 1), out2.shape
    assert jnp.allclose(out2, ref2, atol=1e-2, rtol=1e-2), (
        float(jnp.max(jnp.abs(out2 - ref2))))

    print("KERNEL_OK")
</pallas_src>

<mosaic_0001>
module attributes {stable_mosaic.version = 11 : i64} {
  func.func @_detector_mlp_kernel(%arg0: i32, %arg1: i32, %arg2: memref<128x32xf32, #tpu.memory_space<vmem>>, %arg3: memref<32x32xf32, #tpu.memory_space<vmem>>, %arg4: memref<1x32xf32, #tpu.memory_space<vmem>>, %arg5: memref<1x32xf32, #tpu.memory_space<vmem>>, %arg6: memref<1x1xf32, #tpu.memory_space<smem>>, %arg7: memref<1x128xf32, #tpu.memory_space<vmem>>, %arg8: memref<128x1xf32, #tpu.memory_space<vmem>>) attributes {dimension_semantics = [#tpu.dimension_semantics<parallel>, #tpu.dimension_semantics<arbitrary>], iteration_bounds = array<i64: 3, 1>, scalar_prefetch = 0 : i64, scratch_operands = 1 : i64, tpu.core_type = #tpu.core_type<tc>, window_params = [{transform_indices = @transform_0, window_bounds = array<i64: 128, 32>}, {pipeline_mode = #tpu.pipeline_mode<synchronous>, transform_indices = @transform_1, window_bounds = array<i64: 32, 32>}, {pipeline_mode = #tpu.pipeline_mode<synchronous>, transform_indices = @transform_2, window_bounds = array<i64: 1, 32>}, {pipeline_mode = #tpu.pipeline_mode<synchronous>, transform_indices = @transform_3, window_bounds = array<i64: 1, 32>}, {transform_indices = @transform_4, window_bounds = array<i64: 1, 1>}, {transform_indices = @transform_5, window_bounds = array<i64: 1, 128>}]} {
    %c0_i32 = arith.constant 0 : i32
    %0 = arith.cmpi eq, %arg1, %c0_i32 : i32
    %1 = arith.extui %0 : i1 to i32
    %c0_i32_0 = arith.constant 0 : i32
    %2 = arith.cmpi ne, %1, %c0_i32_0 : i32
    scf.if %2 {
      %cst_16 = arith.constant 0.000000e+00 : f32
      %22 = vector.broadcast %cst_16 : f32 to vector<128x1xf32>
      %c0_17 = arith.constant 0 : index
      %c0_18 = arith.constant 0 : index
      %23 = vector.load %arg8[%c0_17, %c0_18] : memref<128x1xf32, #tpu.memory_space<vmem>>, vector<128x1xf32>
      tpu.vector_store %arg8[%c0_17, %c0_18], %22 {strides = array<i32>} : memref<128x1xf32, #tpu.memory_space<vmem>>, vector<128x1xf32>,
    } else {
    }
    %c0 = arith.constant 0 : index
    %c0_1 = arith.constant 0 : index
    %3 = vector.load %arg2[%c0, %c0_1] : memref<128x32xf32, #tpu.memory_space<vmem>>, vector<128x32xf32>
    %c0_2 = arith.constant 0 : index
    %c0_3 = arith.constant 0 : index
    %4 = vector.load %arg3[%c0_2, %c0_3] : memref<32x32xf32, #tpu.memory_space<vmem>>, vector<32x32xf32>
    %cst = arith.constant dense<0.000000e+00> : vector<128x32xf32>
    %5 = tpu.matmul %3, %4, %cst {dimension_numbers = #tpu.dot_dimension_numbers<[1], [0], [0], [1], [0, 0, 1, 1], [], []>} : vector<128x32xf32>, vector<32x32xf32>, vector<128x32xf32> -> vector<128x32xf32>
    %c0_4 = arith.constant 0 : index
    %c0_5 = arith.constant 0 : index
    %6 = vector.load %arg4[%c0_4, %c0_5] : memref<1x32xf32, #tpu.memory_space<vmem>>, vector<1x32xf32>
    %7 = vector.broadcast %6 : vector<1x32xf32> to vector<128x32xf32>
    %8 = arith.addf %5, %7 : vector<128x32xf32>
    %cst_6 = arith.constant 0.000000e+00 : f32
    %9 = vector.broadcast %cst_6 : f32 to vector<128x32xf32>
    %10 = arith.maximumf %8, %9 : vector<128x32xf32>
    %c0_7 = arith.constant 0 : index
    %c0_8 = arith.constant 0 : index
    %11 = vector.load %arg8[%c0_7, %c0_8] : memref<128x1xf32, #tpu.memory_space<vmem>>, vector<128x1xf32>
    %c0_9 = arith.constant 0 : index
    %c0_10 = arith.constant 0 : index
    %12 = vector.load %arg5[%c0_9, %c0_10] : memref<1x32xf32, #tpu.memory_space<vmem>>, vector<1x32xf32>
    %13 = vector.broadcast %12 : vector<1x32xf32> to vector<128x32xf32>
    %14 = arith.mulf %10, %13 : vector<128x32xf32>
    %cst_11 = arith.constant dense<0.000000e+00> : vector<128xf32>
    %15 = vector.multi_reduction <add>, %14, %cst_11 [1] : vector<128x32xf32> to vector<128xf32>
    %16 = vector.shape_cast %15 : vector<128xf32> to vector<128x1xf32>
    %17 = arith.addf %11, %16 : vector<128x1xf32>
    %c0_12 = arith.constant 0 : index
    %c0_13 = arith.constant 0 : index
    %18 = vector.load %arg8[%c0_12, %c0_13] : memref<128x1xf32, #tpu.memory_space<vmem>>, vector<128x1xf32>
    tpu.vector_store %arg8[%c0_12, %c0_13], %17 {strides = array<i32>} : memref<128x1xf32, #tpu.memory_space<vmem>>, vector<128x1xf32>,
    %c0_i32_14 = arith.constant 0 : i32
    %19 = arith.cmpi eq, %arg1, %c0_i32_14 : i32
    %20 = arith.extui %19 : i1 to i32
    %c0_i32_15 = arith.constant 0 : i32
    %21 = arith.cmpi ne, %20, %c0_i32_15 : i32
    scf.if %21 {
      %c0_16 = arith.constant 0 : index
      %c0_17 = arith.constant 0 : index
      %22 = vector.load %arg8[%c0_16, %c0_17] : memref<128x1xf32, #tpu.memory_space<vmem>>, vector<128x1xf32>
      %c0_18 = arith.constant 0 : index
      %c0_19 = arith.constant 0 : index
      %23 = memref.load %arg6[%c0_18, %c0_19] : memref<1x1xf32, #tpu.memory_space<smem>>
      %24 = vector.broadcast %23 : f32 to vector<128x1xf32>
      %25 = arith.addf %22, %24 : vector<128x1xf32>
      %26 = tpu.transpose %25, [1, 0] : vector<128x1xf32> -> vector<1x128xf32>
      %c0_20 = arith.constant 0 : index
      %c0_21 = arith.constant 0 : index
      %27 = vector.load %arg7[%c0_20, %c0_21] : memref<1x128xf32, #tpu.memory_space<vmem>>, vector<1x128xf32>
      tpu.vector_store %arg7[%c0_20, %c0_21], %26 {strides = array<i32>} : memref<1x128xf32, #tpu.memory_space<vmem>>, vector<1x128xf32>,
    } else {
    }
    return
  }
  func.func @transform_0(%arg0: i32, %arg1: i32) -> (i32, i32) {
    %c0_i32 = arith.constant 0 : i32
    %c0_i32_0 = arith.constant 0 : i32
    return %arg0, %c0_i32 : i32, i32
  }
  func.func @transform_1(%arg0: i32, %arg1: i32) -> (i32, i32) {
    %c0_i32 = arith.constant 0 : i32
    %c0_i32_0 = arith.constant 0 : i32
    return %c0_i32, %arg1 : i32, i32
  }
  func.func @transform_2(%arg0: i32, %arg1: i32) -> (i32, i32) {
    %c0_i32 = arith.constant 0 : i32
    %c0_i32_0 = arith.constant 0 : i32
    return %c0_i32, %arg1 : i32, i32
  }
  func.func @transform_3(%arg0: i32, %arg1: i32) -> (i32, i32) {
    %c0_i32 = arith.constant 0 : i32
    %c0_i32_0 = arith.constant 0 : i32
    return %c0_i32, %arg1 : i32, i32
  }
  func.func @transform_4(%arg0: i32, %arg1: i32) -> (i32, i32) {
    %c0_i32 = arith.constant 0 : i32
    %c0_i32_0 = arith.constant 0 : i32
    %c0_i32_1 = arith.constant 0 : i32
    return %c0_i32, %c0_i32_0 : i32, i32
  }
  func.func @transform_5(%arg0: i32, %arg1: i32) -> (i32, i32) {
    %c0_i32 = arith.constant 0 : i32
    %c0_i32_0 = arith.constant 0 : i32
    return %c0_i32, %arg0 : i32, i32
  }
}

module attributes {stable_mosaic.version = 11 : i64} {
  func.func @_detector_mlp_kernel(%arg0: i32, %arg1: i32, %arg2: memref<128x32xf32, #tpu.memory_space<vmem>>, %arg3: memref<32x32xf32, #tpu.memory_space<vmem>>, %arg4: memref<1x32xf32, #tpu.memory_space<vmem>>, %arg5: memref<1x32xf32, #tpu.memory_space<vmem>>, %arg6: memref<1x1xf32, #tpu.memory_space<smem>>, %arg7: memref<1x128xf32, #tpu.memory_space<vmem>>, %arg8: memref<128x1xf32, #tpu.memory_space<vmem>>) attributes {dimension_semantics = [#tpu.dimension_semantics<parallel>, #tpu.dimension_semantics<arbitrary>], iteration_bounds = array<i64: 3, 1>, scalar_prefetch = 0 : i64, scratch_operands = 1 : i64, tpu.core_type = #tpu.core_type<tc>, window_params = [{transform_indices = @transform_0, window_bounds = array<i64: 128, 32>}, {transform_indices = @transform_1, window_bounds = array<i64: 32, 32>}, {transform_indices = @transform_2, window_bounds = array<i64: 1, 32>}, {transform_indices = @transform_3, window_bounds = array<i64: 1, 32>}, {transform_indices = @transform_4, window_bounds = array<i64: 1, 1>}, {transform_indices = @transform_5, window_bounds = array<i64: 1, 128>}]} {
    %c0_i32 = arith.constant 0 : i32
    %0 = arith.cmpi eq, %arg1, %c0_i32 : i32
    %1 = arith.extui %0 : i1 to i32
    %c0_i32_0 = arith.constant 0 : i32
    %2 = arith.cmpi ne, %1, %c0_i32_0 : i32
    scf.if %2 {
      %cst_16 = arith.constant 0.000000e+00 : f32
      %22 = vector.broadcast %cst_16 : f32 to vector<128x1xf32>
      %c0_17 = arith.constant 0 : index
      %c0_18 = arith.constant 0 : index
      %23 = vector.load %arg8[%c0_17, %c0_18] : memref<128x1xf32, #tpu.memory_space<vmem>>, vector<128x1xf32>
      tpu.vector_store %arg8[%c0_17, %c0_18], %22 {strides = array<i32>} : memref<128x1xf32, #tpu.memory_space<vmem>>, vector<128x1xf32>,
    } else {
    }
    %c0 = arith.constant 0 : index
    %c0_1 = arith.constant 0 : index
    %3 = vector.load %arg2[%c0, %c0_1] : memref<128x32xf32, #tpu.memory_space<vmem>>, vector<128x32xf32>
    %c0_2 = arith.constant 0 : index
    %c0_3 = arith.constant 0 : index
    %4 = vector.load %arg3[%c0_2, %c0_3] : memref<32x32xf32, #tpu.memory_space<vmem>>, vector<32x32xf32>
    %cst = arith.constant dense<0.000000e+00> : vector<128x32xf32>
    %5 = tpu.matmul %3, %4, %cst {dimension_numbers = #tpu.dot_dimension_numbers<[1], [0], [0], [1], [0, 0, 1, 1], [], []>} : vector<128x32xf32>, vector<32x32xf32>, vector<128x32xf32> -> vector<128x32xf32>
    %c0_4 = arith.constant 0 : index
    %c0_5 = arith.constant 0 : index
    %6 = vector.load %arg4[%c0_4, %c0_5] : memref<1x32xf32, #tpu.memory_space<vmem>>, vector<1x32xf32>
    %7 = vector.broadcast %6 : vector<1x32xf32> to vector<128x32xf32>
    %8 = arith.addf %5, %7 : vector<128x32xf32>
    %cst_6 = arith.constant 0.000000e+00 : f32
    %9 = vector.broadcast %cst_6 : f32 to vector<128x32xf32>
    %10 = arith.maximumf %8, %9 : vector<128x32xf32>
    %c0_7 = arith.constant 0 : index
    %c0_8 = arith.constant 0 : index
    %11 = vector.load %arg8[%c0_7, %c0_8] : memref<128x1xf32, #tpu.memory_space<vmem>>, vector<128x1xf32>
    %c0_9 = arith.constant 0 : index
    %c0_10 = arith.constant 0 : index
    %12 = vector.load %arg5[%c0_9, %c0_10] : memref<1x32xf32, #tpu.memory_space<vmem>>, vector<1x32xf32>
    %13 = vector.broadcast %12 : vector<1x32xf32> to vector<128x32xf32>
    %14 = arith.mulf %10, %13 : vector<128x32xf32>
    %cst_11 = arith.constant dense<0.000000e+00> : vector<128xf32>
    %15 = vector.multi_reduction <add>, %14, %cst_11 [1] : vector<128x32xf32> to vector<128xf32>
    %16 = vector.shape_cast %15 : vector<128xf32> to vector<128x1xf32>
    %17 = arith.addf %11, %16 : vector<128x1xf32>
    %c0_12 = arith.constant 0 : index
    %c0_13 = arith.constant 0 : index
    %18 = vector.load %arg8[%c0_12, %c0_13] : memref<128x1xf32, #tpu.memory_space<vmem>>, vector<128x1xf32>
    tpu.vector_store %arg8[%c0_12, %c0_13], %17 {strides = array<i32>} : memref<128x1xf32, #tpu.memory_space<vmem>>, vector<128x1xf32>,
    %c0_i32_14 = arith.constant 0 : i32
    %19 = arith.cmpi eq, %arg1, %c0_i32_14 : i32
    %20 = arith.extui %19 : i1 to i32
    %c0_i32_15 = arith.constant 0 : i32
    %21 = arith.cmpi ne, %20, %c0_i32_15 : i32
    scf.if %21 {
      %c0_16 = arith.constant 0 : index
      %c0_17 = arith.constant 0 : index
      %22 = vector.load %arg8[%c0_16, %c0_17] : memref<128x1xf32, #tpu.memory_space<vmem>>, vector<128x1xf32>
      %c0_18 = arith.constant 0 : index
      %c0_19 = arith.constant 0 : index
      %23 = memref.load %arg6[%c0_18, %c0_19] : memref<1x1xf32, #tpu.memory_space<smem>>
      %24 = vector.broadcast %23 : f32 to vector<128x1xf32>
      %25 = arith.addf %22, %24 : vector<128x1xf32>
      %26 = tpu.transpose %25, [1, 0] : vector<128x1xf32> -> vector<1x128xf32>
      %c0_20 = arith.constant 0 : index
      %c0_21 = arith.constant 0 : index
      %27 = vector.load %arg7[%c0_20, %c0_21] : memref<1x128xf32, #tpu.memory_space<vmem>>, vector<1x128xf32>
      tpu.vector_store %arg7[%c0_20, %c0_21], %26 {strides = array<i32>} : memref<1x128xf32, #tpu.memory_space<vmem>>, vector<1x128xf32>,
    } else {
    }
    return
  }
  func.func @transform_0(%arg0: i32, %arg1: i32) -> (i32, i32) {
    %c0_i32 = arith.constant 0 : i32
    %c0_i32_0 = arith.constant 0 : i32
    return %arg0, %c0_i32 : i32, i32
  }
  func.func @transform_1(%arg0: i32, %arg1: i32) -> (i32, i32) {
    %c0_i32 = arith.constant 0 : i32
    %c0_i32_0 = arith.constant 0 : i32
    return %c0_i32, %arg1 : i32, i32
  }
  func.func @transform_2(%arg0: i32, %arg1: i32) -> (i32, i32) {
    %c0_i32 = arith.constant 0 : i32
    %c0_i32_0 = arith.constant 0 : i32
    return %c0_i32, %arg1 : i32, i32
  }
  func.func @transform_3(%arg0: i32, %arg1: i32) -> (i32, i32) {
    %c0_i32 = arith.constant 0 : i32
    %c0_i32_0 = arith.constant 0 : i32
    return %c0_i32, %arg1 : i32, i32
  }
  func.func @transform_4(%arg0: i32, %arg1: i32) -> (i32, i32) {
    %c0_i32 = arith.constant 0 : i32
    %c0_i32_0 = arith.constant 0 : i32
    %c0_i32_1 = arith.constant 0 : i32
    return %c0_i32, %c0_i32_0 : i32, i32
  }
  func.func @transform_5(%arg0: i32, %arg1: i32) -> (i32, i32) {
    %c0_i32 = arith.constant 0 : i32
    %c0_i32_0 = arith.constant 0 : i32
    return %c0_i32, %arg0 : i32, i32
  }
}

</mosaic_0001>

<bundles_post_ra>
// kernel: tpu_custom_call.1
= control target key start
LH: loop header
LB: loop body
LE: loop exit
PB: predicated region body
PF: predicated region fallthrough
CT: control target
= control target key end

     0   :  { %s1364_s0 = inlined_call_operand.vmem [shape: f32[384,32], index: 0, kind: input, shape index: {}]   ;;  %s1365_s1 = inlined_call_operand.vmem [shape: f32[32,32], index: 1, kind: input, shape index: {}]   ;;  %s1366_s2 = inlined_call_operand.vmem [shape: f32[1,32], index: 2, kind: input, shape index: {}]   ;;  %s1367_s3 = inlined_call_operand.vmem [shape: f32[1,32], index: 3, kind: input, shape index: {}]   ;;  %s1368_s4 = inlined_call_operand.<no memory space> [shape: f32[1,1], index: 4, kind: input, shape index: {}]   ;;  %s1369_s5 = inlined_call_operand.hbm [shape: f32[1,384], index: 5, kind: output, shape index: {}]  }
   0x1   :  { %10 = sst [smem:[#allocation3]] %s1368_s4 }
   0x2   :  { %11 = vsyncpa [#allocation5], 0 }
   0x3   :  { %13 = vsyncpa [#allocation5 + $0x1], 0  ;;  %s1105_s20 = smov 0   ;;  %s1107_s21 = smov 0  }
   0x4   :  { %s1109_s22 = smov 0   ;;  %s1111_s23 = smov 0  }
   0x5   :  { %s1113_s24 = smov 0   ;;  %s1115_s25 = smov 0  }
   0x6 LB: > { %s845_s4 = sadd.s32 4294967295, %s1068_s25   ;;  %s846_s26 = sadd.s32 4294967294, %s1068_s25   ;;  %s1068_s25 = sphi %s1115_s25, %s19_s25   ;;  %s1064_s24 = sphi %s1113_s24, %s1376_s24   ;;  %s1060_s23 = sphi %s1111_s23, %s1375_s23   ;;  %s1056_s22 = sphi %s1109_s22, %s1374_s22   ;;  %s1052_s21 = sphi %s1107_s21, %s1373_s21   ;;  %s1048_s20 = sphi %s1105_s20, %s1372_s20  }
   0x7   : > { %s31_s27 = sadd.s32 1, %s1064_s24  ;;  %s163_s28 = sadd.s32 1, %s1056_s22 }
   0x8   : > { %p33_p0 = scmp.ge.s32.totalorder %s31_s27, 3  ;;  %p173_p1 = scmp.ne.s32.totalorder %s1056_s22, %s1052_s21 }
   0x9   : > { %p174_p2 = scmp.eq.s32.totalorder %s845_s4, 2  ;;  %p179_p3 = scmp.ne.s32.totalorder %s1052_s21, %s1048_s20 }
   0xa   : > { %s1378_s27 = smov (%p33_p0, %s31_s27), 0  ;;  %p180_p5 = scmp.eq.s32.totalorder %s846_s26, 2 }
   0xb   : > { %p1143_p4 = por %p174_p2, %p173_p1  ;;  %s160_s30 = ssub.s32 %s1064_s24, %s1378_s27 }
   0xc   : > { %p852_p6 = scmp.ge.s32.totalorder %s1068_s25, 1  ;;  %p161_p7 = scmp.eq.s32.totalorder %s160_s30, 0 }
   0xd   : > { %p1150_p8 = por %p180_p5, %p179_p3  ;;  %p229_p9 = scmp.lt.s32.totalorder %s1068_s25, 4 }
   0xe   : > { %s1156_s7 = scalar_select %p161_p7, %s1056_s22, %s163_s28  }
   0xf   : > { %p230_p10 = pnand %p852_p6, %p229_p9 }
  0x10   : > { %s1164_s12 = sshll.u32 (!%p230_p10), %s1060_s23, 4  ;;  %s679_s9 = sld [smem:[#allocation3]] (!%p230_p10) }
  0x11   : > { %233 = sbr.rel (%p230_p10) target bundleno = 523 (0x20b), region = 40  ;;  %p267_p11 = scmp.lt.s32.totalorder (!%p230_p10), %s1164_s12, 47 }
  0x12   : > { %s264_s10 = sand.u32 (!%p230_p10), 1, %s1052_s21   ;;  %s741_s16 = scalar_lea.hbm (!%p230_p10), %s1369_s5, %s1164_s12 }
  0x13   : > { %s265_s11 = scalar_lea.vmem (!%p230_p10), [#allocation4], %s264_s10  ;;  %s731_s17 = scalar_lea.sflag (!%p230_p10), [#allocation5], %s264_s10 }
  0x14   : > { %s743_s13 = sshll.u32 (!%p230_p10), %s265_s11, 4  ;;  %s1071_s19 = smov (!%p230_p10), [#allocation4]   ;;  %s1320_s13 = int_to_ptr.vmem [resolvable:$true] %s743_s13 }
  0x15   : > { %s996_s23 = sshll.u32 (!%p230_p10), %s1071_s19, 4  ;;  %s997_s23 = int_to_ptr.vmem [resolvable:$false] %s996_s23 }
  0x16   : > { %v322_v0 = vld [vmem:[%s1365_s1 + $0x18] sm:$0xff]  ;;  %v321_v1 = vld [vmem:[%s1365_s1 + $0x10] sm:$0xff]  ;;  %v320_v2 = vld [vmem:[%s1365_s1 + $0x8] sm:$0xff]  ;;  %s268_s15 = scalar_select %p267_p11, %s1164_s12, 47  ;;  %vm330_vm0 = vcmask 261120   ;;  %vm286_vm1 = vcmask 7168  }
  0x17   : > { %896 = vmatprep.subr.mxu0 %v322_v0  ;;  %928 = vmatprep.subr.mxu1 %v322_v0  ;;  %v319_v3 = vld [vmem:[%s1365_s1] sm:$0xff]  ;;  %v1070_v20 = vmov 0.0   ;;  %p999_p1 = scmp.lt.s32.totalorder %s1320_s13, %s997_s23 }
  0x18   : > { %897 = vmatpush3.msra.mxu0 %v322_v0  ;;  %932 = vmatpush3.msra.mxu1 %v322_v0  ;;  %s854_s18 = sshll.u32 %s268_s15, 3  ;;  %288 = vst.msk [vmem:[#allocation2 + $0x8] sm:$0xff] %vm286_vm1, %v1070_v20  ;;  %287 = vst.msk [vmem:[#allocation2] sm:$0xff] %vm286_vm1, %v1070_v20  ;;  %v1230_v21 = vld [vmem:[%s1366_s2] ss:$0 sm:$0xff] }
  0x19   : > { %898 = vmatprep.subr.mxu0 %v321_v1  ;;  %929 = vmatprep.subr.mxu1 %v321_v1  ;;  %s1177_s4 = scalar_lea.vmem %s1364_s0, %s854_s18  ;;  %289 = vst.msk [vmem:[#allocation2 + $0x10] sm:$0xff] %vm286_vm1, %v1070_v20  ;;  %290 = vst.msk [vmem:[#allocation2 + $0x18] sm:$0xff] %vm286_vm1, %v1070_v20  ;;  %v1236_v26 = vld [vmem:[%s1367_s3] ss:$0 sm:$0xff]  ;;  %s992_s18 = scalar_lea.vmem %s1320_s13, 16 }
  0x1a   : > { %899 = vmatpush3.msra.mxu0 %v321_v1  ;;  %933 = vmatpush3.msra.mxu1 %v321_v1  ;;  %v303_v4 = vld [vmem:[%s1177_s4] sm:$0xff]  ;;  %v304_v5 = vld [vmem:[%s1177_s4 + $0x8] sm:$0xff]  ;;  %v305_v6 = vld [vmem:[%s1177_s4 + $0x10] sm:$0xff]  ;;  %291 = vst.msk [vmem:[#allocation2 + $0x20] sm:$0xff] %vm286_vm1, %v1070_v20  ;;  %p993_p12 = scmp.ne.s32.totalorder %s1320_s13, %s992_s18 }
  0x1b   : > { %900 = vmatprep.subr.mxu0 %v320_v2  ;;  %930 = vmatprep.subr.mxu1 %v320_v2  ;;  %v311_v7 = vld [vmem:[%s1177_s4 + $0x40] sm:$0xff]  ;;  %v312_v8 = vld [vmem:[%s1177_s4 + $0x48] sm:$0xff]  ;;  %v313_v9 = vld [vmem:[%s1177_s4 + $0x50] sm:$0xff]  ;;  %292 = vst.msk [vmem:[#allocation2 + $0x28] sm:$0xff] %vm286_vm1, %v1070_v20 }
  0x1c   : > { %901 = vmatpush3.msra.mxu0 %v320_v2  ;;  %934 = vmatpush3.msra.mxu1 %v320_v2  ;;  %v306_v10 = vld [vmem:[%s1177_s4 + $0x18] sm:$0xff]  ;;  %v307_v11 = vld [vmem:[%s1177_s4 + $0x20] sm:$0xff]  ;;  %v308_v14 = vld [vmem:[%s1177_s4 + $0x28] sm:$0xff]  ;;  %293 = vst.msk [vmem:[#allocation2 + $0x30] sm:$0xff] %vm286_vm1, %v1070_v20  ;;  %p994_p13 = pnand %p993_p12, %p1143_p4 }
  0x1d   : > { %902 = vmatprep.subr.mxu0 %v319_v3  ;;  %931 = vmatprep.subr.mxu1 %v319_v3  ;;  %v314_v12 = vld [vmem:[%s1177_s4 + $0x58] sm:$0xff]  ;;  %v315_v13 = vld [vmem:[%s1177_s4 + $0x60] sm:$0xff]  ;;  %v309_v15 = vld [vmem:[%s1177_s4 + $0x30] sm:$0xff]  ;;  %294 = vst.msk [vmem:[#allocation2 + $0x38] sm:$0xff] %vm286_vm1, %v1070_v20 }
  0x1e   : > { %903 = vmatpush3.msra.mxu0 %v319_v3  ;;  %904 = vmatprep.mubr.msk.f32.mxu0 %vm330_vm0, %v303_v4  ;;  %v316_v16 = vld [vmem:[%s1177_s4 + $0x68] sm:$0xff]  ;;  %v317_v17 = vld [vmem:[%s1177_s4 + $0x70] sm:$0xff]  ;;  %v310_v18 = vld [vmem:[%s1177_s4 + $0x38] sm:$0xff]  ;;  %295 = vst.msk [vmem:[#allocation2 + $0x40] sm:$0xff] %vm286_vm1, %v1070_v20  ;;  %p995_p0 = pneg %p994_p13 }
  0x1f   : > { %905 = vmatmul.mubr.msk.f32.vlgmr.msra.gmra.mxu0 %vm330_vm0, %v304_v5  ;;  %935 = vmatpush3.msra.mxu1 %v319_v3  ;;  %v318_v19 = vld [vmem:[%s1177_s4 + $0x78] sm:$0xff]  ;;  %296 = vst.msk [vmem:[#allocation2 + $0x48] sm:$0xff] %vm286_vm1, %v1070_v20  ;;  %297 = vst.msk [vmem:[#allocation2 + $0x50] sm:$0xff] %vm286_vm1, %v1070_v20  ;;  %s998_s4 = scalar_lea.vmem %s997_s23, 32 }
  0x20   : > { %907 = vmatprep.mubr.msk.f32.mxu0 %vm330_vm0, %v305_v6  ;;  %916 = vmatprep.mubr.msk.f32.mxu1 %vm330_vm0, %v311_v7  ;;  %298 = vst.msk [vmem:[#allocation2 + $0x58] sm:$0xff] %vm286_vm1, %v1070_v20  ;;  %299 = vst.msk [vmem:[#allocation2 + $0x60] sm:$0xff] %vm286_vm1, %v1070_v20  ;;  %p1000_p2 = scmp.lt.s32.totalorder %s998_s4, %s992_s18 }
  0x21   : > { %917 = vmatmul.mubr.msk.f32.vlgmr.msra.gmra.mxu1 %vm330_vm0, %v312_v8  ;;  %300 = vst.msk [vmem:[#allocation2 + $0x68] sm:$0xff] %vm286_vm1, %v1070_v20  ;;  %301 = vst.msk [vmem:[#allocation2 + $0x70] sm:$0xff] %vm286_vm1, %v1070_v20 }
  0x22   : > { %919 = vmatprep.mubr.msk.f32.mxu1 %vm330_vm0, %v313_v9  ;;  %302 = vst.msk [vmem:[#allocation2 + $0x78] sm:$0xff] %vm286_vm1, %v1070_v20  ;;  %p1001_p3 = por %p1000_p2, %p999_p1 }
  0x23   : > { %908 = vmatmul.mubr.msk.f32.gmra.mxu0 %vm330_vm0, %v306_v10 }
  0x24   : > { %910 = vmatprep.mubr.msk.f32.mxu0 %vm330_vm0, %v307_v11  ;;  %p1002_p5 = pnand %p1001_p3, %p995_p0 }
  0x25   : > { %920 = vmatmul.mubr.msk.f32.gmra.mxu1 %vm330_vm0, %v314_v12 }
  0x26   : > { %922 = vmatprep.mubr.msk.f32.mxu1 %vm330_vm0, %v315_v13 }
  0x27   : > { %911 = vmatmul.mubr.msk.f32.gmra.mxu0 %vm330_vm0, %v308_v14 }
  0x28   : > { %913 = vmatprep.mubr.msk.f32.mxu0 %vm330_vm0, %v309_v15 }
  0x29   : > { %923 = vmatmul.mubr.msk.f32.gmra.mxu1 %vm330_vm0, %v316_v16 }
  0x2a   : > { %925 = vmatprep.mubr.msk.f32.mxu1 %vm330_vm0, %v317_v17 }
  0x2b   : > { %914 = vmatmul.mubr.msk.f32.gmra.mxu0 %vm330_vm0, %v310_v18 }
  0x2d   : > { %926 = vmatmul.mubr.msk.f32.gmra.mxu1 %vm330_vm0, %v318_v19 }
  0xdf   : > { %v906_v22 = vpop.f32.mrf.mxu0 }
  0xe0   : > { %v451_v23 = vadd.f32 %v906_v22, %v1230_v21 }
  0xe1   : > { %v445_v24 = vpop.f32.mrf.mxu0  ;;  %v918_v25 = vpop.f32.mrf.mxu1 }
  0xe2   : > { %v525_v27 = vmax.f32 %v451_v23, 0.0  ;;  %v446_v28 = vadd.f32 %v1230_v21, %v445_v24  ;;  %v491_v5 = vadd.f32 %v918_v25, %v1230_v21 }
  0xe3   : > { %v909_v29 = vpop.f32.mrf.mxu0  ;;  %v485_v30 = vpop.f32.mrf.mxu1 }
  0xe4   : > { %v524_v31 = vmax.f32 %v446_v28, 0.0  ;;  %v461_v32 = vadd.f32 %v909_v29, %v1230_v21  ;;  %v564_v33 = vmul.f32 %v1236_v26, %v525_v27  ;;  %v486_v35 = vadd.f32 %v1230_v21, %v485_v30 }
  0xe5   : > { %v455_v34 = vpop.f32.mrf.mxu0  ;;  %v921_v36 = vpop.f32.mrf.mxu1  ;;  %v533_v13 = vmax.f32 %v491_v5, 0.0  ;;  %v552_v5 = vld [vmem:[#allocation2 + $0x60] sm:$0xff] }
  0xe6   : > { %v527_v37 = vmax.f32 %v461_v32, 0.0  ;;  %v456_v38 = vadd.f32 %v1230_v21, %v455_v34  ;;  %v582_v39 = vsel %vm330_vm0, %v564_v33, 0.0  ;;  %v563_v40 = vmul.f32 %v1236_v26, %v524_v31 }
  0xe7   : > { %583 = vadd.xlane.f32.xlu0 %v582_v39  ;;  %v532_v41 = vmax.f32 %v486_v35, 0.0  ;;  %v912_v42 = vpop.f32.mrf.mxu0  ;;  %v495_v43 = vpop.f32.mrf.mxu1  ;;  %v501_v14 = vadd.f32 %v921_v36, %v1230_v21  ;;  %v572_v22 = vmul.f32 %v1236_v26, %v533_v13  ;;  %v546_v13 = vld [vmem:[#allocation2 + $0x30] sm:$0xff] }
  0xe8   : > { %v526_v44 = vmax.f32 %v456_v38, 0.0  ;;  %v471_v45 = vadd.f32 %v912_v42, %v1230_v21  ;;  %v496_v46 = vadd.f32 %v1230_v21, %v495_v43  ;;  %v579_v47 = vsel %vm330_vm0, %v563_v40, 0.0  ;;  %v541_v40 = vld [vmem:[#allocation2 + $0x8] sm:$0xff]  ;;  %v540_v43 = vld [vmem:[#allocation2] sm:$0xff] }
  0xe9   : > { %v465_v48 = vpop.f32.mrf.mxu0  ;;  %v571_v49 = vmul.f32 %v1236_v26, %v532_v41  ;;  %v924_v50 = vpop.f32.mrf.mxu1  ;;  %v566_v54 = vmul.f32 %v1236_v26, %v527_v37  ;;  %v535_v20 = vmax.f32 %v501_v14, 0.0  ;;  %v606_v29 = vsel %vm330_vm0, %v572_v22, 0.0  ;;  %v554_v22 = vld [vmem:[#allocation2 + $0x70] sm:$0xff] }
  0xea   : > { %v529_v51 = vmax.f32 %v471_v45, 0.0  ;;  %v466_v52 = vadd.f32 %v1230_v21, %v465_v48  ;;  %v565_v53 = vmul.f32 %v1236_v26, %v526_v44  ;;  %v534_v56 = vmax.f32 %v496_v46, 0.0  ;;  %v542_v45 = vld [vmem:[#allocation2 + $0x10] sm:$0xff]  ;;  %v548_v48 = vld [vmem:[#allocation2 + $0x40] sm:$0xff] }
  0xeb   : > { %580 = vadd.xlane.f32.xlu0 %v579_v47  ;;  %v915_v55 = vpop.f32.mrf.mxu0  ;;  %v603_v57 = vsel %vm330_vm0, %v571_v49, 0.0  ;;  %v505_v58 = vpop.f32.mrf.mxu1  ;;  %v588_v2 = vsel %vm330_vm0, %v566_v54, 0.0  ;;  %v511_v23 = vadd.f32 %v924_v50, %v1230_v21  ;;  %v574_v31 = vmul.f32 %v1236_v26, %v535_v20  ;;  %v543_v49 = vld [vmem:[#allocation2 + $0x18] sm:$0xff] }
  0xec   : > { %v528_v59 = vmax.f32 %v466_v52, 0.0  ;;  %v585_v60 = vsel %vm330_vm0, %v565_v53, 0.0  ;;  %v481_v61 = vadd.f32 %v915_v55, %v1230_v21  ;;  %v506_v62 = vadd.f32 %v1230_v21, %v505_v58  ;;  %v544_v53 = vld [vmem:[#allocation2 + $0x20] sm:$0xff]  ;;  %v545_v55 = vld [vmem:[#allocation2 + $0x28] sm:$0xff] }
  0xed   : > { %586 = vadd.xlane.f32.xlu1 %v585_v60  ;;  %v475_v63 = vpop.f32.mrf.mxu0  ;;  %v927_v0 = vpop.f32.mrf.mxu1  ;;  %v568_v3 = vmul.f32 %v1236_v26, %v529_v51  ;;  %v573_v9 = vmul.f32 %v1236_v26, %v534_v56  ;;  %v537_v30 = vmax.f32 %v511_v23, 0.0  ;;  %v612_v35 = vsel %vm330_vm0, %v574_v31, 0.0 }
  0xee   : > { %v531_v1 = vmax.f32 %v481_v61, 0.0  ;;  %v567_v4 = vmul.f32 %v1236_v26, %v528_v59  ;;  %v536_v6 = vmax.f32 %v506_v62, 0.0  ;;  %v476_v8 = vadd.f32 %v1230_v21, %v475_v63  ;;  %v550_v61 = vld [vmem:[#allocation2 + $0x50] sm:$0xff] }
  0xef   : > { %604 = vadd.xlane.f32.xlu0 %v603_v57  ;;  %v515_v10 = vpop.f32.mrf.mxu1  ;;  %v594_v11 = vsel %vm330_vm0, %v568_v3, 0.0  ;;  %v609_v16 = vsel %vm330_vm0, %v573_v9, 0.0  ;;  %v521_v28 = vadd.f32 %v927_v0, %v1230_v21  ;;  %v576_v36 = vmul.f32 %v1236_v26, %v537_v30  ;;  %v547_v0 = vld [vmem:[#allocation2 + $0x38] sm:$0xff] }
  0xf0   : > { %v591_v7 = vsel %vm330_vm0, %v567_v4, 0.0  ;;  %v570_v12 = vmul.f32 %v1236_v26, %v531_v1  ;;  %v530_v15 = vmax.f32 %v476_v8, 0.0  ;;  %v575_v17 = vmul.f32 %v1236_v26, %v536_v6  ;;  %v549_v8 = vld [vmem:[#allocation2 + $0x48] sm:$0xff] }
  0xf1   : > { %589 = vadd.xlane.f32.xlu1 %v588_v2  ;;  %v516_v18 = vadd.f32 %v1230_v21, %v515_v10  ;;  %v539_v34 = vmax.f32 %v521_v28, 0.0  ;;  %v618_v38 = vsel %vm330_vm0, %v576_v36, 0.0  ;;  %v1290_v60 = vstv %s679_s9 }
  0xf2   : > { %v600_v19 = vsel %vm330_vm0, %v570_v12, 0.0  ;;  %v615_v24 = vsel %vm330_vm0, %v575_v17, 0.0  ;;  %v569_v25 = vmul.f32 %v1236_v26, %v530_v15 }
  0xf3   : > { %592 = vadd.xlane.f32.xlu0 %v591_v7  ;;  %v538_v27 = vmax.f32 %v516_v18, 0.0  ;;  %v578_v21 = vmul.f32 %v1236_v26, %v539_v34  ;;  %v555_v34 = vld [vmem:[#allocation2 + $0x78] sm:$0xff] }
  0xf4   : > { %v597_v32 = vsel %vm330_vm0, %v569_v25, 0.0  ;;  %v553_v25 = vld [vmem:[#allocation2 + $0x68] sm:$0xff] }
  0xf5   : > { %595 = vadd.xlane.f32.xlu1 %v594_v11  ;;  %v577_v33 = vmul.f32 %v1236_v26, %v538_v27  ;;  %v624_v39 = vsel %vm330_vm0, %v578_v21, 0.0 }
  0xf7   : > { %610 = vadd.xlane.f32.xlu0 %v609_v16  ;;  %v621_v37 = vsel %vm330_vm0, %v577_v33, 0.0  ;;  %v551_v16 = vld [vmem:[#allocation2 + $0x58] sm:$0xff] }
  0xf9   : > { %601 = vadd.xlane.f32.xlu1 %v600_v19 }
  0xfb   : > { %616 = vadd.xlane.f32.xlu0 %v615_v24 }
  0xfd   : > { %607 = vadd.xlane.f32.xlu1 %v606_v29 }
  0xff   : > { %598 = vadd.xlane.f32.xlu0 %v597_v32 }
 0x101   : > { %613 = vadd.xlane.f32.xlu1 %v612_v35 }
 0x103   : > { %622 = vadd.xlane.f32.xlu0 %v621_v37 }
 0x105   : > { %619 = vadd.xlane.f32.xlu1 %v618_v38 }
 0x109   : > { %625 = vadd.xlane.f32.xlu1 %v624_v39 }
 0x170   : > { %v584_v41 = vpop.xlane.xlu0 %583 }
 0x171   : > { %v628_v42 = vadd.f32 %v584_v41, %v541_v40 }
 0x173   : > { %645 = vst.msk [vmem:[#allocation2 + $0x8] sm:$0xff] %vm286_vm1, %v628_v42 }
 0x174   : > { %v581_v44 = vpop.xlane.xlu0 %580 }
 0x175   : > { %v627_v46 = vadd.f32 %v581_v44, %v540_v43 }
 0x176   : > { %v587_v47 = vpop.xlane.xlu1 %586 }
 0x177   : > { %644 = vst.msk [vmem:[#allocation2] sm:$0xff] %vm286_vm1, %v627_v46  ;;  %v629_v26 = vadd.f32 %v587_v47, %v542_v45 }
 0x178   : > { %v605_v50 = vpop.xlane.xlu0 %604 }
 0x179   : > { %646 = vst.msk [vmem:[#allocation2 + $0x10] sm:$0xff] %vm286_vm1, %v629_v26  ;;  %v635_v51 = vadd.f32 %v605_v50, %v548_v48 }
 0x17a   : > { %v590_v52 = vpop.xlane.xlu1 %589  ;;  %v664_v2 = vld [vmem:[#allocation2 + $0x8] sm:$0xff] }
 0x17b   : > { %v630_v54 = vadd.f32 %v590_v52, %v543_v49  ;;  %652 = vst.msk [vmem:[#allocation2 + $0x40] sm:$0xff] %vm286_vm1, %v635_v51  ;;  %v682_v7 = vadd.f32 %v1290_v60, %v664_v2 }
 0x17c   : > { %v593_v56 = vpop.xlane.xlu0 %592 }
 0x17d   : > { %647 = vst.msk [vmem:[#allocation2 + $0x18] sm:$0xff] %vm286_vm1, %v630_v54  ;;  %v631_v57 = vadd.f32 %v593_v56, %v544_v53 }
 0x17e   : > { %v596_v58 = vpop.xlane.xlu1 %595  ;;  %v663_v59 = vld [vmem:[#allocation2] sm:$0xff] }
 0x17f   : > { %v632_v62 = vadd.f32 %v596_v58, %v545_v55  ;;  %648 = vst.msk [vmem:[#allocation2 + $0x20] sm:$0xff] %vm286_vm1, %v631_v57  ;;  %v681_v63 = vadd.f32 %v1290_v60, %v663_v59 }
 0x180   : > { %v611_v1 = vpop.xlane.xlu0 %610  ;;  %v665_v10 = vld [vmem:[#allocation2 + $0x10] sm:$0xff] }
 0x181   : > { %649 = vst.msk [vmem:[#allocation2 + $0x28] sm:$0xff] %vm286_vm1, %v632_v62  ;;  %697 = vxpose.xlu0.b32.start [1/16] (narrow) %v681_v63, 8  ;;  %v637_v3 = vadd.f32 %v611_v1, %v550_v61  ;;  %v683_v15 = vadd.f32 %v1290_v60, %v665_v10 }
 0x182   : > { %v602_v4 = vpop.xlane.xlu1 %601  ;;  %v671_v41 = vld [vmem:[#allocation2 + $0x40] sm:$0xff] }
 0x183   : > { %v634_v6 = vadd.f32 %v602_v4, %v547_v0  ;;  %654 = vst.msk [vmem:[#allocation2 + $0x50] sm:$0xff] %vm286_vm1, %v637_v3  ;;  %v689_v42 = vadd.f32 %v1290_v60, %v671_v41 }
 0x184   : > { %v617_v9 = vpop.xlane.xlu0 %616  ;;  %v666_v18 = vld [vmem:[#allocation2 + $0x18] sm:$0xff] }
 0x185   : > { %651 = vst.msk [vmem:[#allocation2 + $0x38] sm:$0xff] %vm286_vm1, %v634_v6  ;;  %698 = vxpose.xlu0.b32.cont [2/16] (narrow) %v682_v7, 8  ;;  %v639_v11 = vadd.f32 %v617_v9, %v552_v5  ;;  %v684_v24 = vadd.f32 %v1290_v60, %v666_v18 }
 0x186   : > { %v608_v12 = vpop.xlane.xlu1 %607  ;;  %v667_v27 = vld [vmem:[#allocation2 + $0x20] sm:$0xff] }
 0x187   : > { %v636_v14 = vadd.f32 %v608_v12, %v549_v8  ;;  %656 = vst.msk [vmem:[#allocation2 + $0x60] sm:$0xff] %vm286_vm1, %v639_v11  ;;  %v685_v32 = vadd.f32 %v1290_v60, %v667_v27 }
 0x188   : > { %v599_v17 = vpop.xlane.xlu0 %598  ;;  %v668_v33 = vld [vmem:[#allocation2 + $0x28] sm:$0xff] }
 0x189   : > { %653 = vst.msk [vmem:[#allocation2 + $0x48] sm:$0xff] %vm286_vm1, %v636_v14  ;;  %699 = vxpose.xlu0.b32.cont [3/16] (narrow) %v683_v15, 8  ;;  %v633_v19 = vadd.f32 %v599_v17, %v546_v13  ;;  %v686_v36 = vadd.f32 %v1290_v60, %v668_v33 }
 0x18a   : > { %v614_v20 = vpop.xlane.xlu1 %613  ;;  %v673_v45 = vld [vmem:[#allocation2 + $0x50] sm:$0xff] }
 0x18b   : > { %v638_v23 = vadd.f32 %v614_v20, %v551_v16  ;;  %650 = vst.msk [vmem:[#allocation2 + $0x30] sm:$0xff] %vm286_vm1, %v633_v19  ;;  %v691_v46 = vadd.f32 %v1290_v60, %v673_v45 }
 0x18c   : > { %v623_v28 = vpop.xlane.xlu0 %622  ;;  %v670_v39 = vld [vmem:[#allocation2 + $0x38] sm:$0xff] }
 0x18d   : > { %655 = vst.msk [vmem:[#allocation2 + $0x58] sm:$0xff] %vm286_vm1, %v638_v23  ;;  %700 = vxpose.xlu0.b32.cont [4/16] (narrow) %v684_v24, 8  ;;  %v641_v29 = vadd.f32 %v623_v28, %v554_v22  ;;  %v688_v40 = vadd.f32 %v1290_v60, %v670_v39 }
 0x18e   : > { %v620_v30 = vpop.xlane.xlu1 %619  ;;  %v675_v26 = vld [vmem:[#allocation2 + $0x60] sm:$0xff] }
 0x18f   : > { %v640_v31 = vadd.f32 %v620_v30, %v553_v25  ;;  %658 = vst.msk [vmem:[#allocation2 + $0x70] sm:$0xff] %vm286_vm1, %v641_v29  ;;  %v693_v49 = vadd.f32 %v1290_v60, %v675_v26 }
 0x190   : > { %v672_v43 = vld [vmem:[#allocation2 + $0x48] sm:$0xff] }
 0x191   : > { %657 = vst.msk [vmem:[#allocation2 + $0x68] sm:$0xff] %vm286_vm1, %v640_v31  ;;  %701 = vxpose.xlu0.b32.cont [5/16] (narrow) %v685_v32, 8  ;;  %v690_v44 = vadd.f32 %v1290_v60, %v672_v43 }
 0x192   : > { %v626_v35 = vpop.xlane.xlu1 %625  ;;  %v669_v21 = vld [vmem:[#allocation2 + $0x30] sm:$0xff] }
 0x193   : > { %v642_v37 = vadd.f32 %v626_v35, %v555_v34  ;;  %v687_v38 = vadd.f32 %v1290_v60, %v669_v21 }
 0x194   : > { %v674_v47 = vld [vmem:[#allocation2 + $0x58] sm:$0xff] }
 0x195   : > { %702 = vxpose.xlu0.b32.cont [6/16] (narrow) %v686_v36, 8  ;;  %659 = vst.msk [vmem:[#allocation2 + $0x78] sm:$0xff] %vm286_vm1, %v642_v37  ;;  %v692_v48 = vadd.f32 %v1290_v60, %v674_v47 }
 0x196   : > { %v677_v52 = vld [vmem:[#allocation2 + $0x70] sm:$0xff] }
 0x197   : > { %v695_v53 = vadd.f32 %v1290_v60, %v677_v52 }
 0x198   : > { %v676_v50 = vld [vmem:[#allocation2 + $0x68] sm:$0xff] }
 0x199   : > { %703 = vxpose.xlu0.b32.cont [7/16] (narrow) %v687_v38, 8  ;;  %v694_v51 = vadd.f32 %v1290_v60, %v676_v50 }
 0x19c   : > { %v678_v54 = vld [vmem:[#allocation2 + $0x78] sm:$0xff] }
 0x19d   : > { %704 = vxpose.xlu0.b32.cont [8/16] (narrow) %v688_v40, 8  ;;  %v696_v55 = vadd.f32 %v1290_v60, %v678_v54 }
 0x1a1   : > { %705 = vxpose.xlu0.b32.cont [9/16] (narrow) %v689_v42, 8 }
 0x1a5   : > { %706 = vxpose.xlu0.b32.cont [10/16] (narrow) %v690_v44, 8 }
 0x1a9   : > { %707 = vxpose.xlu0.b32.cont [11/16] (narrow) %v691_v46, 8 }
 0x1ad   : > { %708 = vxpose.xlu0.b32.cont [12/16] (narrow) %v692_v48, 8 }
 0x1b1   : > { %709 = vxpose.xlu0.b32.cont [13/16] (narrow) %v693_v49, 8 }
 0x1b5   : > { %710 = vxpose.xlu0.b32.cont [14/16] (narrow) %v694_v51, 8 }
 0x1b9   : > { %711 = vxpose.xlu0.b32.cont [15/16] (narrow) %v695_v53, 8 }
 0x1bd   : > { %712 = vxpose.xlu0.b32.end [16/16] (narrow) %v696_v55, 8 }
 0x1fd   : > { %v713_v56 = vpop.trf.xlu0 }
 0x1fe   : > { %729 = vst [vmem:[%s265_s11] sm:$0x1] %v713_v56 }
 0x1ff   : > { %1005 = shalt.err (!%p1002_p5)
}
 0x200   : > { %s1006_s26 = scalar_lea.hbm %s741_s16, 16  ;;  %s1010_s30 = scalar_lea.hbm %s1369_s5, 48 }
 0x201   : > { %p1007_p6 = scmp.ne.s32.totalorder %s741_s16, %s1006_s26  ;;  %p1011_p10 = scmp.lt.s32.totalorder %s741_s16, %s1369_s5 }
 0x202   : > { %p1012_p11 = scmp.lt.s32.totalorder %s1010_s30, %s1006_s26 }
 0x203   : > { %p1008_p7 = pnand %p1007_p6, %p1143_p4 }
 0x204   : > { %p1013_p12 = por %p1012_p11, %p1011_p10 }
 0x205   : > { %p1009_p9 = pneg %p1008_p7 }
 0x207   : > { %p1014_p13 = pnand %p1013_p12, %p1009_p9 }
 0x209   : > { %1017 = shalt.err (!%p1014_p13)
}
 0x20a   : > { %936 = dma.vmem_to_hbm [thread:$0]  (%p1143_p4), %s1320_s13, 16, %s741_s16, %s731_s17  }
 0x20b PF: > { %p942_p0 = scmp.ge.s32.totalorder %s1068_s25, 2  ;;  %s755_s10 = sand.u32 1, %s1048_s20  }
 0x20c   : > { %s756_s11 = scalar_lea.sflag [#allocation5], %s755_s10 }
 0x20d   : > { %p939_p1 = pnand %p942_p0, %p1150_p8 }
 0x20f   : > { %p940_p2 = pneg %p939_p1 }
 0x211   : > { %1043 = dma.done.wait (%p940_p2), %s756_s11, 16  }
 0x212   : > { %1045 = vsyncadd (%p940_p2), %s756_s11, 4294967280  ;;  %s19_s25 = sadd.s32 1, %s1068_s25   ;;  %s1372_s20 = smov %s1052_s21 }
 0x213   : > { %p16_p3 = scmp.ge.s32.totalorder %s19_s25, 5   ;;  %s1373_s21 = smov %s1056_s22 }
 0x214   : > { %s1374_s22 = smov %s1156_s7  ;;  %s1375_s23 = smov %s1064_s24 }
 0x215   : > { %s1376_s24 = smov %s1378_s27  ;;  %18 = sbr.rel (!%p16_p3) target bundleno = 6 (0x6), region = 92 }
 0x21a   :  { %760 = vsyncpa [#allocation5], 1 }
 0x21b   :  { %762 = vsyncpa [#allocation5 + $0x1], 1 }

// kernel: tpu_custom_call.1
= control target key start
LH: loop header
LB: loop body
LE: loop exit
PB: predicated region body
PF: predicated region fallthrough
CT: control target
= control target key end

     0   :  { %s1364_s0 = inlined_call_operand.vmem [shape: f32[384,32], index: 0, kind: input, shape index: {}]   ;;  %s1365_s1 = inlined_call_operand.vmem [shape: f32[32,32], index: 1, kind: input, shape index: {}]   ;;  %s1366_s2 = inlined_call_operand.vmem [shape: f32[1,32], index: 2, kind: input, shape index: {}]   ;;  %s1367_s3 = inlined_call_operand.vmem [shape: f32[1,32], index: 3, kind: input, shape index: {}]   ;;  %s1368_s4 = inlined_call_operand.<no memory space> [shape: f32[1,1], index: 4, kind: input, shape index: {}]   ;;  %s1369_s5 = inlined_call_operand.hbm [shape: f32[1,384], index: 5, kind: output, shape index: {}]  }
   0x1   :  { %10 = sst [smem:[#allocation3]] %s1368_s4 }
   0x2   :  { %11 = vsyncpa [#allocation5], 0 }
   0x3   :  { %13 = vsyncpa [#allocation5 + $0x1], 0  ;;  %s1105_s20 = smov 0   ;;  %s1107_s21 = smov 0  }
   0x4   :  { %s1109_s22 = smov 0   ;;  %s1111_s23 = smov 0  }
   0x5   :  { %s1113_s24 = smov 0   ;;  %s1115_s25 = smov 0  }
   0x6 LB: > { %s845_s4 = sadd.s32 4294967295, %s1068_s25   ;;  %s846_s26 = sadd.s32 4294967294, %s1068_s25   ;;  %s1068_s25 = sphi %s1115_s25, %s19_s25   ;;  %s1064_s24 = sphi %s1113_s24, %s1376_s24   ;;  %s1060_s23 = sphi %s1111_s23, %s1375_s23   ;;  %s1056_s22 = sphi %s1109_s22, %s1374_s22   ;;  %s1052_s21 = sphi %s1107_s21, %s1373_s21   ;;  %s1048_s20 = sphi %s1105_s20, %s1372_s20  }
   0x7   : > { %s31_s27 = sadd.s32 1, %s1064_s24  ;;  %s163_s28 = sadd.s32 1, %s1056_s22 }
   0x8   : > { %p33_p0 = scmp.ge.s32.totalorder %s31_s27, 3  ;;  %p173_p1 = scmp.ne.s32.totalorder %s1056_s22, %s1052_s21 }
   0x9   : > { %p174_p2 = scmp.eq.s32.totalorder %s845_s4, 2  ;;  %p179_p3 = scmp.ne.s32.totalorder %s1052_s21, %s1048_s20 }
   0xa   : > { %s1378_s27 = smov (%p33_p0, %s31_s27), 0  ;;  %p180_p5 = scmp.eq.s32.totalorder %s846_s26, 2 }
   0xb   : > { %p1143_p4 = por %p174_p2, %p173_p1  ;;  %s160_s30 = ssub.s32 %s1064_s24, %s1378_s27 }
   0xc   : > { %p852_p6 = scmp.ge.s32.totalorder %s1068_s25, 1  ;;  %p161_p7 = scmp.eq.s32.totalorder %s160_s30, 0 }
   0xd   : > { %p1150_p8 = por %p180_p5, %p179_p3  ;;  %p229_p9 = scmp.lt.s32.totalorder %s1068_s25, 4 }
   0xe   : > { %s1156_s7 = scalar_select %p161_p7, %s1056_s22, %s163_s28  }
   0xf   : > { %p230_p10 = pnand %p852_p6, %p229_p9 }
  0x10   : > { %s1164_s12 = sshll.u32 (!%p230_p10), %s1060_s23, 4  ;;  %s679_s9 = sld [smem:[#allocation3]] (!%p230_p10) }
  0x11   : > { %233 = sbr.rel (%p230_p10) target bundleno = 523 (0x20b), region = 40  ;;  %p267_p11 = scmp.lt.s32.totalorder (!%p230_p10), %s1164_s12, 47 }
  0x12   : > { %s264_s10 = sand.u32 (!%p230_p10), 1, %s1052_s21   ;;  %s741_s16 = scalar_lea.hbm (!%p230_p10), %s1369_s5, %s1164_s12 }
  0x13   : > { %s265_s11 = scalar_lea.vmem (!%p230_p10), [#allocation4], %s264_s10  ;;  %s731_s17 = scalar_lea.sflag (!%p230_p10), [#allocation5], %s264_s10 }
  0x14   : > { %s743_s13 = sshll.u32 (!%p230_p10), %s265_s11, 4  ;;  %s1071_s19 = smov (!%p230_p10), [#allocation4]   ;;  %s1320_s13 = int_to_ptr.vmem [resolvable:$true] %s743_s13 }
  0x15   : > { %s996_s23 = sshll.u32 (!%p230_p10), %s1071_s19, 4  ;;  %s997_s23 = int_to_ptr.vmem [resolvable:$false] %s996_s23 }
  0x16   : > { %v322_v0 = vld [vmem:[%s1365_s1 + $0x18] sm:$0xff]  ;;  %v321_v1 = vld [vmem:[%s1365_s1 + $0x10] sm:$0xff]  ;;  %v320_v2 = vld [vmem:[%s1365_s1 + $0x8] sm:$0xff]  ;;  %s268_s15 = scalar_select %p267_p11, %s1164_s12, 47  ;;  %vm330_vm0 = vcmask 261120   ;;  %vm286_vm1 = vcmask 7168  }
  0x17   : > { %896 = vmatprep.subr.mxu0 %v322_v0  ;;  %928 = vmatprep.subr.mxu1 %v322_v0  ;;  %v319_v3 = vld [vmem:[%s1365_s1] sm:$0xff]  ;;  %v1070_v20 = vmov 0.0   ;;  %p999_p1 = scmp.lt.s32.totalorder %s1320_s13, %s997_s23 }
  0x18   : > { %897 = vmatpush3.msra.mxu0 %v322_v0  ;;  %932 = vmatpush3.msra.mxu1 %v322_v0  ;;  %s854_s18 = sshll.u32 %s268_s15, 3  ;;  %288 = vst.msk [vmem:[#allocation2 + $0x8] sm:$0xff] %vm286_vm1, %v1070_v20  ;;  %287 = vst.msk [vmem:[#allocation2] sm:$0xff] %vm286_vm1, %v1070_v20  ;;  %v1230_v21 = vld [vmem:[%s1366_s2] ss:$0 sm:$0xff] }
  0x19   : > { %898 = vmatprep.subr.mxu0 %v321_v1  ;;  %929 = vmatprep.subr.mxu1 %v321_v1  ;;  %s1177_s4 = scalar_lea.vmem %s1364_s0, %s854_s18  ;;  %289 = vst.msk [vmem:[#allocation2 + $0x10] sm:$0xff] %vm286_vm1, %v1070_v20  ;;  %290 = vst.msk [vmem:[#allocation2 + $0x18] sm:$0xff] %vm286_vm1, %v1070_v20  ;;  %v1236_v26 = vld [vmem:[%s1367_s3] ss:$0 sm:$0xff]  ;;  %s992_s18 = scalar_lea.vmem %s1320_s13, 16 }
  0x1a   : > { %899 = vmatpush3.msra.mxu0 %v321_v1  ;;  %933 = vmatpush3.msra.mxu1 %v321_v1  ;;  %v303_v4 = vld [vmem:[%s1177_s4] sm:$0xff]  ;;  %v304_v5 = vld [vmem:[%s1177_s4 + $0x8] sm:$0xff]  ;;  %v305_v6 = vld [vmem:[%s1177_s4 + $0x10] sm:$0xff]  ;;  %291 = vst.msk [vmem:[#allocation2 + $0x20] sm:$0xff] %vm286_vm1, %v1070_v20  ;;  %p993_p12 = scmp.ne.s32.totalorder %s1320_s13, %s992_s18 }
  0x1b   : > { %900 = vmatprep.subr.mxu0 %v320_v2  ;;  %930 = vmatprep.subr.mxu1 %v320_v2  ;;  %v311_v7 = vld [vmem:[%s1177_s4 + $0x40] sm:$0xff]  ;;  %v312_v8 = vld [vmem:[%s1177_s4 + $0x48] sm:$0xff]  ;;  %v313_v9 = vld [vmem:[%s1177_s4 + $0x50] sm:$0xff]  ;;  %292 = vst.msk [vmem:[#allocation2 + $0x28] sm:$0xff] %vm286_vm1, %v1070_v20 }
  0x1c   : > { %901 = vmatpush3.msra.mxu0 %v320_v2  ;;  %934 = vmatpush3.msra.mxu1 %v320_v2  ;;  %v306_v10 = vld [vmem:[%s1177_s4 + $0x18] sm:$0xff]  ;;  %v307_v11 = vld [vmem:[%s1177_s4 + $0x20] sm:$0xff]  ;;  %v308_v14 = vld [vmem:[%s1177_s4 + $0x28] sm:$0xff]  ;;  %293 = vst.msk [vmem:[#allocation2 + $0x30] sm:$0xff] %vm286_vm1, %v1070_v20  ;;  %p994_p13 = pnand %p993_p12, %p1143_p4 }
  0x1d   : > { %902 = vmatprep.subr.mxu0 %v319_v3  ;;  %931 = vmatprep.subr.mxu1 %v319_v3  ;;  %v314_v12 = vld [vmem:[%s1177_s4 + $0x58] sm:$0xff]  ;;  %v315_v13 = vld [vmem:[%s1177_s4 + $0x60] sm:$0xff]  ;;  %v309_v15 = vld [vmem:[%s1177_s4 + $0x30] sm:$0xff]  ;;  %294 = vst.msk [vmem:[#allocation2 + $0x38] sm:$0xff] %vm286_vm1, %v1070_v20 }
  0x1e   : > { %903 = vmatpush3.msra.mxu0 %v319_v3  ;;  %904 = vmatprep.mubr.msk.f32.mxu0 %vm330_vm0, %v303_v4  ;;  %v316_v16 = vld [vmem:[%s1177_s4 + $0x68] sm:$0xff]  ;;  %v317_v17 = vld [vmem:[%s1177_s4 + $0x70] sm:$0xff]  ;;  %v310_v18 = vld [vmem:[%s1177_s4 + $0x38] sm:$0xff]  ;;  %295 = vst.msk [vmem:[#allocation2 + $0x40] sm:$0xff] %vm286_vm1, %v1070_v20  ;;  %p995_p0 = pneg %p994_p13 }
  0x1f   : > { %905 = vmatmul.mubr.msk.f32.vlgmr.msra.gmra.mxu0 %vm330_vm0, %v304_v5  ;;  %935 = vmatpush3.msra.mxu1 %v319_v3  ;;  %v318_v19 = vld [vmem:[%s1177_s4 + $0x78] sm:$0xff]  ;;  %296 = vst.msk [vmem:[#allocation2 + $0x48] sm:$0xff] %vm286_vm1, %v1070_v20  ;;  %297 = vst.msk [vmem:[#allocation2 + $0x50] sm:$0xff] %vm286_vm1, %v1070_v20  ;;  %s998_s4 = scalar_lea.vmem %s997_s23, 32 }
  0x20   : > { %907 = vmatprep.mubr.msk.f32.mxu0 %vm330_vm0, %v305_v6  ;;  %916 = vmatprep.mubr.msk.f32.mxu1 %vm330_vm0, %v311_v7  ;;  %298 = vst.msk [vmem:[#allocation2 + $0x58] sm:$0xff] %vm286_vm1, %v1070_v20  ;;  %299 = vst.msk [vmem:[#allocation2 + $0x60] sm:$0xff] %vm286_vm1, %v1070_v20  ;;  %p1000_p2 = scmp.lt.s32.totalorder %s998_s4, %s992_s18 }
  0x21   : > { %917 = vmatmul.mubr.msk.f32.vlgmr.msra.gmra.mxu1 %vm330_vm0, %v312_v8  ;;  %300 = vst.msk [vmem:[#allocation2 + $0x68] sm:$0xff] %vm286_vm1, %v1070_v20  ;;  %301 = vst.msk [vmem:[#allocation2 + $0x70] sm:$0xff] %vm286_vm1, %v1070_v20 }
  0x22   : > { %919 = vmatprep.mubr.msk.f32.mxu1 %vm330_vm0, %v313_v9  ;;  %302 = vst.msk [vmem:[#allocation2 + $0x78] sm:$0xff] %vm286_vm1, %v1070_v20  ;;  %p1001_p3 = por %p1000_p2, %p999_p1 }
  0x23   : > { %908 = vmatmul.mubr.msk.f32.gmra.mxu0 %vm330_vm0, %v306_v10 }
  0x24   : > { %910 = vmatprep.mubr.msk.f32.mxu0 %vm330_vm0, %v307_v11  ;;  %p1002_p5 = pnand %p1001_p3, %p995_p0 }
  0x25   : > { %920 = vmatmul.mubr.msk.f32.gmra.mxu1 %vm330_vm0, %v314_v12 }
  0x26   : > { %922 = vmatprep.mubr.msk.f32.mxu1 %vm330_vm0, %v315_v13 }
  0x27   : > { %911 = vmatmul.mubr.msk.f32.gmra.mxu0 %vm330_vm0, %v308_v14 }
  0x28   : > { %913 = vmatprep.mubr.msk.f32.mxu0 %vm330_vm0, %v309_v15 }
  0x29   : > { %923 = vmatmul.mubr.msk.f32.gmra.mxu1 %vm330_vm0, %v316_v16 }
  0x2a   : > { %925 = vmatprep.mubr.msk.f32.mxu1 %vm330_vm0, %v317_v17 }
  0x2b   : > { %914 = vmatmul.mubr.msk.f32.gmra.mxu0 %vm330_vm0, %v310_v18 }
  0x2d   : > { %926 = vmatmul.mubr.msk.f32.gmra.mxu1 %vm330_vm0, %v318_v19 }
  0xdf   : > { %v906_v22 = vpop.f32.mrf.mxu0 }
  0xe0   : > { %v451_v23 = vadd.f32 %v906_v22, %v1230_v21 }
  0xe1   : > { %v445_v24 = vpop.f32.mrf.mxu0  ;;  %v918_v25 = vpop.f32.mrf.mxu1 }
  0xe2   : > { %v525_v27 = vmax.f32 %v451_v23, 0.0  ;;  %v446_v28 = vadd.f32 %v1230_v21, %v445_v24  ;;  %v491_v5 = vadd.f32 %v918_v25, %v1230_v21 }
  0xe3   : > { %v909_v29 = vpop.f32.mrf.mxu0  ;;  %v485_v30 = vpop.f32.mrf.mxu1 }
  0xe4   : > { %v524_v31 = vmax.f32 %v446_v28, 0.0  ;;  %v461_v32 = vadd.f32 %v909_v29, %v1230_v21  ;;  %v564_v33 = vmul.f32 %v1236_v26, %v525_v27  ;;  %v486_v35 = vadd.f32 %v1230_v21, %v485_v30 }
  0xe5   : > { %v455_v34 = vpop.f32.mrf.mxu0  ;;  %v921_v36 = vpop.f32.mrf.mxu1  ;;  %v533_v13 = vmax.f32 %v491_v5, 0.0  ;;  %v552_v5 = vld [vmem:[#allocation2 + $0x60] sm:$0xff] }
  0xe6   : > { %v527_v37 = vmax.f32 %v461_v32, 0.0  ;;  %v456_v38 = vadd.f32 %v1230_v21, %v455_v34  ;;  %v582_v39 = vsel %vm330_vm0, %v564_v33, 0.0  ;;  %v563_v40 = vmul.f32 %v1236_v26, %v524_v31 }
  0xe7   : > { %583 = vadd.xlane.f32.xlu0 %v582_v39  ;;  %v532_v41 = vmax.f32 %v486_v35, 0.0  ;;  %v912_v42 = vpop.f32.mrf.mxu0  ;;  %v495_v43 = vpop.f32.mrf.mxu1  ;;  %v501_v14 = vadd.f32 %v921_v36, %v1230_v21  ;;  %v572_v22 = vmul.f32 %v1236_v26, %v533_v13  ;;  %v546_v13 = vld [vmem:[#allocation2 + $0x30] sm:$0xff] }
  0xe8   : > { %v526_v44 = vmax.f32 %v456_v38, 0.0  ;;  %v471_v45 = vadd.f32 %v912_v42, %v1230_v21  ;;  %v496_v46 = vadd.f32 %v1230_v21, %v495_v43  ;;  %v579_v47 = vsel %vm330_vm0, %v563_v40, 0.0  ;;  %v541_v40 = vld [vmem:[#allocation2 + $0x8] sm:$0xff]  ;;  %v540_v43 = vld [vmem:[#allocation2] sm:$0xff] }
  0xe9   : > { %v465_v48 = vpop.f32.mrf.mxu0  ;;  %v571_v49 = vmul.f32 %v1236_v26, %v532_v41  ;;  %v924_v50 = vpop.f32.mrf.mxu1  ;;  %v566_v54 = vmul.f32 %v1236_v26, %v527_v37  ;;  %v535_v20 = vmax.f32 %v501_v14, 0.0  ;;  %v606_v29 = vsel %vm330_vm0, %v572_v22, 0.0  ;;  %v554_v22 = vld [vmem:[#allocation2 + $0x70] sm:$0xff] }
  0xea   : > { %v529_v51 = vmax.f32 %v471_v45, 0.0  ;;  %v466_v52 = vadd.f32 %v1230_v21, %v465_v48  ;;  %v565_v53 = vmul.f32 %v1236_v26, %v526_v44  ;;  %v534_v56 = vmax.f32 %v496_v46, 0.0  ;;  %v542_v45 = vld [vmem:[#allocation2 + $0x10] sm:$0xff]  ;;  %v548_v48 = vld [vmem:[#allocation2 + $0x40] sm:$0xff] }
  0xeb   : > { %580 = vadd.xlane.f32.xlu0 %v579_v47  ;;  %v915_v55 = vpop.f32.mrf.mxu0  ;;  %v603_v57 = vsel %vm330_vm0, %v571_v49, 0.0  ;;  %v505_v58 = vpop.f32.mrf.mxu1  ;;  %v588_v2 = vsel %vm330_vm0, %v566_v54, 0.0  ;;  %v511_v23 = vadd.f32 %v924_v50, %v1230_v21  ;;  %v574_v31 = vmul.f32 %v1236_v26, %v535_v20  ;;  %v543_v49 = vld [vmem:[#allocation2 + $0x18] sm:$0xff] }
  0xec   : > { %v528_v59 = vmax.f32 %v466_v52, 0.0  ;;  %v585_v60 = vsel %vm330_vm0, %v565_v53, 0.0  ;;  %v481_v61 = vadd.f32 %v915_v55, %v1230_v21  ;;  %v506_v62 = vadd.f32 %v1230_v21, %v505_v58  ;;  %v544_v53 = vld [vmem:[#allocation2 + $0x20] sm:$0xff]  ;;  %v545_v55 = vld [vmem:[#allocation2 + $0x28] sm:$0xff] }
  0xed   : > { %586 = vadd.xlane.f32.xlu1 %v585_v60  ;;  %v475_v63 = vpop.f32.mrf.mxu0  ;;  %v927_v0 = vpop.f32.mrf.mxu1  ;;  %v568_v3 = vmul.f32 %v1236_v26, %v529_v51  ;;  %v573_v9 = vmul.f32 %v1236_v26, %v534_v56  ;;  %v537_v30 = vmax.f32 %v511_v23, 0.0  ;;  %v612_v35 = vsel %vm330_vm0, %v574_v31, 0.0 }
  0xee   : > { %v531_v1 = vmax.f32 %v481_v61, 0.0  ;;  %v567_v4 = vmul.f32 %v1236_v26, %v528_v59  ;;  %v536_v6 = vmax.f32 %v506_v62, 0.0  ;;  %v476_v8 = vadd.f32 %v1230_v21, %v475_v63  ;;  %v550_v61 = vld [vmem:[#allocation2 + $0x50] sm:$0xff] }
  0xef   : > { %604 = vadd.xlane.f32.xlu0 %v603_v57  ;;  %v515_v10 = vpop.f32.mrf.mxu1  ;;  %v594_v11 = vsel %vm330_vm0, %v568_v3, 0.0  ;;  %v609_v16 = vsel %vm330_vm0, %v573_v9, 0.0  ;;  %v521_v28 = vadd.f32 %v927_v0, %v1230_v21  ;;  %v576_v36 = vmul.f32 %v1236_v26, %v537_v30  ;;  %v547_v0 = vld [vmem:[#allocation2 + $0x38] sm:$0xff] }
  0xf0   : > { %v591_v7 = vsel %vm330_vm0, %v567_v4, 0.0  ;;  %v570_v12 = vmul.f32 %v1236_v26, %v531_v1  ;;  %v530_v15 = vmax.f32 %v476_v8, 0.0  ;;  %v575_v17 = vmul.f32 %v1236_v26, %v536_v6  ;;  %v549_v8 = vld [vmem:[#allocation2 + $0x48] sm:$0xff] }
  0xf1   : > { %589 = vadd.xlane.f32.xlu1 %v588_v2  ;;  %v516_v18 = vadd.f32 %v1230_v21, %v515_v10  ;;  %v539_v34 = vmax.f32 %v521_v28, 0.0  ;;  %v618_v38 = vsel %vm330_vm0, %v576_v36, 0.0  ;;  %v1290_v60 = vstv %s679_s9 }
  0xf2   : > { %v600_v19 = vsel %vm330_vm0, %v570_v12, 0.0  ;;  %v615_v24 = vsel %vm330_vm0, %v575_v17, 0.0  ;;  %v569_v25 = vmul.f32 %v1236_v26, %v530_v15 }
  0xf3   : > { %592 = vadd.xlane.f32.xlu0 %v591_v7  ;;  %v538_v27 = vmax.f32 %v516_v18, 0.0  ;;  %v578_v21 = vmul.f32 %v1236_v26, %v539_v34  ;;  %v555_v34 = vld [vmem:[#allocation2 + $0x78] sm:$0xff] }
  0xf4   : > { %v597_v32 = vsel %vm330_vm0, %v569_v25, 0.0  ;;  %v553_v25 = vld [vmem:[#allocation2 + $0x68] sm:$0xff] }
  0xf5   : > { %595 = vadd.xlane.f32.xlu1 %v594_v11  ;;  %v577_v33 = vmul.f32 %v1236_v26, %v538_v27  ;;  %v624_v39 = vsel %vm330_vm0, %v578_v21, 0.0 }
  0xf7   : > { %610 = vadd.xlane.f32.xlu0 %v609_v16  ;;  %v621_v37 = vsel %vm330_vm0, %v577_v33, 0.0  ;;  %v551_v16 = vld [vmem:[#allocation2 + $0x58] sm:$0xff] }
  0xf9   : > { %601 = vadd.xlane.f32.xlu1 %v600_v19 }
  0xfb   : > { %616 = vadd.xlane.f32.xlu0 %v615_v24 }
  0xfd   : > { %607 = vadd.xlane.f32.xlu1 %v606_v29 }
  0xff   : > { %598 = vadd.xlane.f32.xlu0 %v597_v32 }
 0x101   : > { %613 = vadd.xlane.f32.xlu1 %v612_v35 }
 0x103   : > { %622 = vadd.xlane.f32.xlu0 %v621_v37 }
 0x105   : > { %619 = vadd.xlane.f32.xlu1 %v618_v38 }
 0x109   : > { %625 = vadd.xlane.f32.xlu1 %v624_v39 }
 0x170   : > { %v584_v41 = vpop.xlane.xlu0 %583 }
 0x171   : > { %v628_v42 = vadd.f32 %v584_v41, %v541_v40 }
 0x173   : > { %645 = vst.msk [vmem:[#allocation2 + $0x8] sm:$0xff] %vm286_vm1, %v628_v42 }
 0x174   : > { %v581_v44 = vpop.xlane.xlu0 %580 }
 0x175   : > { %v627_v46 = vadd.f32 %v581_v44, %v540_v43 }
 0x176   : > { %v587_v47 = vpop.xlane.xlu1 %586 }
 0x177   : > { %644 = vst.msk [vmem:[#allocation2] sm:$0xff] %vm286_vm1, %v627_v46  ;;  %v629_v26 = vadd.f32 %v587_v47, %v542_v45 }
 0x178   : > { %v605_v50 = vpop.xlane.xlu0 %604 }
 0x179   : > { %646 = vst.msk [vmem:[#allocation2 + $0x10] sm:$0xff] %vm286_vm1, %v629_v26  ;;  %v635_v51 = vadd.f32 %v605_v50, %v548_v48 }
 0x17a   : > { %v590_v52 = vpop.xlane.xlu1 %589  ;;  %v664_v2 = vld [vmem:[#allocation2 + $0x8] sm:$0xff] }
 0x17b   : > { %v630_v54 = vadd.f32 %v590_v52, %v543_v49  ;;  %652 = vst.msk [vmem:[#allocation2 + $0x40] sm:$0xff] %vm286_vm1, %v635_v51  ;;  %v682_v7 = vadd.f32 %v1290_v60, %v664_v2 }
 0x17c   : > { %v593_v56 = vpop.xlane.xlu0 %592 }
 0x17d   : > { %647 = vst.msk [vmem:[#allocation2 + $0x18] sm:$0xff] %vm286_vm1, %v630_v54  ;;  %v631_v57 = vadd.f32 %v593_v56, %v544_v53 }
 0x17e   : > { %v596_v58 = vpop.xlane.xlu1 %595  ;;  %v663_v59 = vld [vmem:[#allocation2] sm:$0xff] }
 0x17f   : > { %v632_v62 = vadd.f32 %v596_v58, %v545_v55  ;;  %648 = vst.msk [vmem:[#allocation2 + $0x20] sm:$0xff] %vm286_vm1, %v631_v57  ;;  %v681_v63 = vadd.f32 %v1290_v60, %v663_v59 }
 0x180   : > { %v611_v1 = vpop.xlane.xlu0 %610  ;;  %v665_v10 = vld [vmem:[#allocation2 + $0x10] sm:$0xff] }
 0x181   : > { %649 = vst.msk [vmem:[#allocation2 + $0x28] sm:$0xff] %vm286_vm1, %v632_v62  ;;  %697 = vxpose.xlu0.b32.start [1/16] (narrow) %v681_v63, 8  ;;  %v637_v3 = vadd.f32 %v611_v1, %v550_v61  ;;  %v683_v15 = vadd.f32 %v1290_v60, %v665_v10 }
 0x182   : > { %v602_v4 = vpop.xlane.xlu1 %601  ;;  %v671_v41 = vld [vmem:[#allocation2 + $0x40] sm:$0xff] }
 0x183   : > { %v634_v6 = vadd.f32 %v602_v4, %v547_v0  ;;  %654 = vst.msk [vmem:[#allocation2 + $0x50] sm:$0xff] %vm286_vm1, %v637_v3  ;;  %v689_v42 = vadd.f32 %v1290_v60, %v671_v41 }
 0x184   : > { %v617_v9 = vpop.xlane.xlu0 %616  ;;  %v666_v18 = vld [vmem:[#allocation2 + $0x18] sm:$0xff] }
 0x185   : > { %651 = vst.msk [vmem:[#allocation2 + $0x38] sm:$0xff] %vm286_vm1, %v634_v6  ;;  %698 = vxpose.xlu0.b32.cont [2/16] (narrow) %v682_v7, 8  ;;  %v639_v11 = vadd.f32 %v617_v9, %v552_v5  ;;  %v684_v24 = vadd.f32 %v1290_v60, %v666_v18 }
 0x186   : > { %v608_v12 = vpop.xlane.xlu1 %607  ;;  %v667_v27 = vld [vmem:[#allocation2 + $0x20] sm:$0xff] }
 0x187   : > { %v636_v14 = vadd.f32 %v608_v12, %v549_v8  ;;  %656 = vst.msk [vmem:[#allocation2 + $0x60] sm:$0xff] %vm286_vm1, %v639_v11  ;;  %v685_v32 = vadd.f32 %v1290_v60, %v667_v27 }
 0x188   : > { %v599_v17 = vpop.xlane.xlu0 %598  ;;  %v668_v33 = vld [vmem:[#allocation2 + $0x28] sm:$0xff] }
 0x189   : > { %653 = vst.msk [vmem:[#allocation2 + $0x48] sm:$0xff] %vm286_vm1, %v636_v14  ;;  %699 = vxpose.xlu0.b32.cont [3/16] (narrow) %v683_v15, 8  ;;  %v633_v19 = vadd.f32 %v599_v17, %v546_v13  ;;  %v686_v36 = vadd.f32 %v1290_v60, %v668_v33 }
 0x18a   : > { %v614_v20 = vpop.xlane.xlu1 %613  ;;  %v673_v45 = vld [vmem:[#allocation2 + $0x50] sm:$0xff] }
 0x18b   : > { %v638_v23 = vadd.f32 %v614_v20, %v551_v16  ;;  %650 = vst.msk [vmem:[#allocation2 + $0x30] sm:$0xff] %vm286_vm1, %v633_v19  ;;  %v691_v46 = vadd.f32 %v1290_v60, %v673_v45 }
 0x18c   : > { %v623_v28 = vpop.xlane.xlu0 %622  ;;  %v670_v39 = vld [vmem:[#allocation2 + $0x38] sm:$0xff] }
 0x18d   : > { %655 = vst.msk [vmem:[#allocation2 + $0x58] sm:$0xff] %vm286_vm1, %v638_v23  ;;  %700 = vxpose.xlu0.b32.cont [4/16] (narrow) %v684_v24, 8  ;;  %v641_v29 = vadd.f32 %v623_v28, %v554_v22  ;;  %v688_v40 = vadd.f32 %v1290_v60, %v670_v39 }
 0x18e   : > { %v620_v30 = vpop.xlane.xlu1 %619  ;;  %v675_v26 = vld [vmem:[#allocation2 + $0x60] sm:$0xff] }
 0x18f   : > { %v640_v31 = vadd.f32 %v620_v30, %v553_v25  ;;  %658 = vst.msk [vmem:[#allocation2 + $0x70] sm:$0xff] %vm286_vm1, %v641_v29  ;;  %v693_v49 = vadd.f32 %v1290_v60, %v675_v26 }
 0x190   : > { %v672_v43 = vld [vmem:[#allocation2 + $0x48] sm:$0xff] }
 0x191   : > { %657 = vst.msk [vmem:[#allocation2 + $0x68] sm:$0xff] %vm286_vm1, %v640_v31  ;;  %701 = vxpose.xlu0.b32.cont [5/16] (narrow) %v685_v32, 8  ;;  %v690_v44 = vadd.f32 %v1290_v60, %v672_v43 }
 0x192   : > { %v626_v35 = vpop.xlane.xlu1 %625  ;;  %v669_v21 = vld [vmem:[#allocation2 + $0x30] sm:$0xff] }
 0x193   : > { %v642_v37 = vadd.f32 %v626_v35, %v555_v34  ;;  %v687_v38 = vadd.f32 %v1290_v60, %v669_v21 }
 0x194   : > { %v674_v47 = vld [vmem:[#allocation2 + $0x58] sm:$0xff] }
 0x195   : > { %702 = vxpose.xlu0.b32.cont [6/16] (narrow) %v686_v36, 8  ;;  %659 = vst.msk [vmem:[#allocation2 + $0x78] sm:$0xff] %vm286_vm1, %v642_v37  ;;  %v692_v48 = vadd.f32 %v1290_v60, %v674_v47 }
 0x196   : > { %v677_v52 = vld [vmem:[#allocation2 + $0x70] sm:$0xff] }
 0x197   : > { %v695_v53 = vadd.f32 %v1290_v60, %v677_v52 }
 0x198   : > { %v676_v50 = vld [vmem:[#allocation2 + $0x68] sm:$0xff] }
 0x199   : > { %703 = vxpose.xlu0.b32.cont [7/16] (narrow) %v687_v38, 8  ;;  %v694_v51 = vadd.f32 %v1290_v60, %v676_v50 }
 0x19c   : > { %v678_v54 = vld [vmem:[#allocation2 + $0x78] sm:$0xff] }
 0x19d   : > { %704 = vxpose.xlu0.b32.cont [8/16] (narrow) %v688_v40, 8  ;;  %v696_v55 = vadd.f32 %v1290_v60, %v678_v54 }
 0x1a1   : > { %705 = vxpose.xlu0.b32.cont [9/16] (narrow) %v689_v42, 8 }
 0x1a5   : > { %706 = vxpose.xlu0.b32.cont [10/16] (narrow) %v690_v44, 8 }
 0x1a9   : > { %707 = vxpose.xlu0.b32.cont [11/16] (narrow) %v691_v46, 8 }
 0x1ad   : > { %708 = vxpose.xlu0.b32.cont [12/16] (narrow) %v692_v48, 8 }
 0x1b1   : > { %709 = vxpose.xlu0.b32.cont [13/16] (narrow) %v693_v49, 8 }
 0x1b5   : > { %710 = vxpose.xlu0.b32.cont [14/16] (narrow) %v694_v51, 8 }
 0x1b9   : > { %711 = vxpose.xlu0.b32.cont [15/16] (narrow) %v695_v53, 8 }
 0x1bd   : > { %712 = vxpose.xlu0.b32.end [16/16] (narrow) %v696_v55, 8 }
 0x1fd   : > { %v713_v56 = vpop.trf.xlu0 }
 0x1fe   : > { %729 = vst [vmem:[%s265_s11] sm:$0x1] %v713_v56 }
 0x1ff   : > { %1005 = shalt.err (!%p1002_p5)
}
 0x200   : > { %s1006_s26 = scalar_lea.hbm %s741_s16, 16  ;;  %s1010_s30 = scalar_lea.hbm %s1369_s5, 48 }
 0x201   : > { %p1007_p6 = scmp.ne.s32.totalorder %s741_s16, %s1006_s26  ;;  %p1011_p10 = scmp.lt.s32.totalorder %s741_s16, %s1369_s5 }
 0x202   : > { %p1012_p11 = scmp.lt.s32.totalorder %s1010_s30, %s1006_s26 }
 0x203   : > { %p1008_p7 = pnand %p1007_p6, %p1143_p4 }
 0x204   : > { %p1013_p12 = por %p1012_p11, %p1011_p10 }
 0x205   : > { %p1009_p9 = pneg %p1008_p7 }
 0x207   : > { %p1014_p13 = pnand %p1013_p12, %p1009_p9 }
 0x209   : > { %1017 = shalt.err (!%p1014_p13)
}
 0x20a   : > { %936 = dma.vmem_to_hbm [thread:$0]  (%p1143_p4), %s1320_s13, 16, %s741_s16, %s731_s17  }
 0x20b PF: > { %p942_p0 = scmp.ge.s32.totalorder %s1068_s25, 2  ;;  %s755_s10 = sand.u32 1, %s1048_s20  }
 0x20c   : > { %s756_s11 = scalar_lea.sflag [#allocation5], %s755_s10 }
 0x20d   : > { %p939_p1 = pnand %p942_p0, %p1150_p8 }
 0x20f   : > { %p940_p2 = pneg %p939_p1 }
 0x211   : > { %1043 = dma.done.wait (%p940_p2), %s756_s11, 16  }
 0x212   : > { %1045 = vsyncadd (%p940_p2), %s756_s11, 4294967280  ;;  %s19_s25 = sadd.s32 1, %s1068_s25   ;;  %s1372_s20 = smov %s1052_s21 }
 0x213   : > { %p16_p3 = scmp.ge.s32.totalorder %s19_s25, 5   ;;  %s1373_s21 = smov %s1056_s22 }
 0x214   : > { %s1374_s22 = smov %s1156_s7  ;;  %s1375_s23 = smov %s1064_s24 }
 0x215   : > { %s1376_s24 = smov %s1378_s27  ;;  %18 = sbr.rel (!%p16_p3) target bundleno = 6 (0x6), region = 92 }
 0x21a   :  { %760 = vsyncpa [#allocation5], 1 }
 0x21b   :  { %762 = vsyncpa [#allocation5 + $0x1], 1 }

</bundles_post_ra>
